<compile_context>
chip_gen: v5e
topology: v5e:2x2
jax: 0.10.0
libtpu: 0.0.40
codegen_flags: <defaults>
</compile_context>

<pallas_src>
import functools

import jax
import jax.numpy as jnp
from jax.experimental import pallas as pl
from jax.experimental.pallas import tpu as pltpu


def backward_forward_kernel(y_ref,
                            wb1_ref, bb1_ref,
                            wmid_ref, bmid_ref,
                            wf2_ref, bf2_ref,
                            out_ref):
    # Cast matmul operands to the weight dtype (bf16 or f32); accumulate in f32.
    cdt = wb1_ref.dtype
    y = y_ref[...].astype(cdt)

    # backward_model layer 1: Linear -> ReLU   (bias add / ReLU in f32)
    h1 = jnp.dot(y, wb1_ref[...], preferred_element_type=jnp.float32) + bb1_ref[...]
    h1 = jnp.maximum(h1, 0.0)

    # Folded middle Linear: (backward L2) @ (forward L1), then ReLU.
    h2 = jnp.dot(h1.astype(cdt), wmid_ref[...],
                 preferred_element_type=jnp.float32) + bmid_ref[...]
    h2 = jnp.maximum(h2, 0.0)

    # forward_model layer 2: Linear
    out = jnp.dot(h2.astype(cdt), wf2_ref[...],
                  preferred_element_type=jnp.float32) + bf2_ref[...]

    out_ref[...] = out.astype(out_ref.dtype)


def _default_tile_b(B):
    """Pick a batch tile: >=2 grid steps when the batch allows it (megacore),
    capped at 512 rows (measured ~85% of HBM roofline), sublane (8) aligned."""
    if B >= 1024:
        return 512
    if B >= 16:
        return max(8, (((B + 1) // 2) // 8) * 8)
    return B


@functools.partial(jax.jit, static_argnames=("tile_b", "use_bf16"))
def backward_forward(y, params, *, tile_b=None, use_bf16=True):
    """y: (B, Dy) float32. params: dict of f32 weights/biases (see init_params)."""
    B, Dy = y.shape
    wb1, bb1, wb2, bb2 = params["wb1"], params["bb1"], params["wb2"], params["bb2"]
    wf1, bf1, wf2, bf2 = params["wf1"], params["bf1"], params["wf2"], params["bf2"]
    H = wb1.shape[1]
    Dy_out = wf2.shape[1]

    # --- wrapper-side algebraic fold of the two adjacent Linears (f32) ------
    w_mid = wb2 @ wf1                      # (H, H)
    b_mid = bb2 @ wf1 + bf1                # (1, H)

    # --- dtype handling: bf16 matmul operands, f32 biases/accumulation ------
    wdt = jnp.bfloat16 if use_bf16 else jnp.float32
    wb1_c, wmid_c, wf2_c = (w.astype(wdt) for w in (wb1, w_mid, wf2))
    bb1_c, bmid_c, bf2_c = (b.astype(jnp.float32) for b in (bb1, b_mid, bf2))

    # --- batch tiling (pad ragged batches to a multiple of tile_b) ----------
    if tile_b is None:
        tile_b = _default_tile_b(B)
    B_pad = pl.cdiv(B, tile_b) * tile_b
    y_in = jnp.pad(y, ((0, B_pad - B), (0, 0))) if B_pad != B else y
    grid = (B_pad // tile_b,)

    def full_spec(shape):
        # whole-array block, same block for every grid step (stays resident)
        return pl.BlockSpec(shape, lambda i, _n=len(shape): (0,) * _n)

    out = pl.pallas_call(
        backward_forward_kernel,
        out_shape=jax.ShapeDtypeStruct((B_pad, Dy_out), y.dtype),
        grid_spec=pltpu.PrefetchScalarGridSpec(
            num_scalar_prefetch=0,
            grid=grid,
            in_specs=[
                pl.BlockSpec((tile_b, Dy), lambda i: (i, 0)),
                full_spec(wb1_c.shape), full_spec(bb1_c.shape),
                full_spec(wmid_c.shape), full_spec(bmid_c.shape),
                full_spec(wf2_c.shape), full_spec(bf2_c.shape),
            ],
            out_specs=pl.BlockSpec((tile_b, Dy_out), lambda i: (i, 0)),
        ),
        compiler_params=pltpu.CompilerParams(
            dimension_semantics=("parallel",)),
    )(y_in, wb1_c, bb1_c, wmid_c, bmid_c, wf2_c, bf2_c)

    return out[:B] if B_pad != B else out


def init_params(key, dy, dx, hidden):
    """Deterministic PyTorch-Linear-style init: U(-1/sqrt(fan_in), 1/sqrt(fan_in))."""
    ks = jax.random.split(key, 8)

    def linear(kw, kb, fan_in, fan_out):
        bound = 1.0 / jnp.sqrt(fan_in)
        w = jax.random.uniform(kw, (fan_in, fan_out), jnp.float32, -bound, bound)
        b = jax.random.uniform(kb, (1, fan_out), jnp.float32, -bound, bound)
        return w, b

    wb1, bb1 = linear(ks[0], ks[1], dy, hidden)      # backward_model layer 1
    wb2, bb2 = linear(ks[2], ks[3], hidden, dx)      # backward_model layer 2
    wf1, bf1 = linear(ks[4], ks[5], dx, hidden)      # forward_model layer 1
    wf2, bf2 = linear(ks[6], ks[7], hidden, dy)      # forward_model layer 2
    return dict(wb1=wb1, bb1=bb1, wb2=wb2, bb2=bb2,
                wf1=wf1, bf1=bf1, wf2=wf2, bf2=bf2)


def reference(y, p):
    h1 = jnp.maximum(y @ p["wb1"] + p["bb1"], 0.0)
    x1 = h1 @ p["wb2"] + p["bb2"]
    h2 = jnp.maximum(x1 @ p["wf1"] + p["bf1"], 0.0)
    return h2 @ p["wf2"] + p["bf2"]


if __name__ == "__main__":
    key = jax.random.PRNGKey(0)
    k_in, k_par, k_in2 = jax.random.split(key, 3)

    B, Dy, Dx, H = 8, 32, 16, 64
    y_data = jax.random.normal(k_in, (B, Dy), jnp.float32)
    params = init_params(k_par, Dy, Dx, H)
    ref = reference(y_data, params)

    # 1) f32 path: exact (up to the wb2@wf1 fold reassociation) vs reference.
    out_f32 = jax.block_until_ready(backward_forward(y_data, params, use_bf16=False))
    assert out_f32.shape == (B, Dy)
    assert jnp.allclose(out_f32, ref, atol=1e-4, rtol=1e-4), "f32 mismatch vs reference"

    # 2) bf16-matmul path (default): f32 accumulation, looser tolerance.
    out_bf16 = jax.block_until_ready(backward_forward(y_data, params, use_bf16=True))
    assert out_bf16.shape == (B, Dy)
    assert jnp.allclose(out_bf16, ref, atol=3e-2, rtol=3e-2), "bf16 mismatch vs reference"

    # 3) Ragged, multi-step-grid path (exercises padding + pipelined batch tiles).
    B2 = 130
    y2 = jax.random.normal(k_in2, (B2, Dy), jnp.float32)
    ref2 = reference(y2, params)
    out2 = jax.block_until_ready(backward_forward(y2, params, use_bf16=False))
    assert out2.shape == (B2, Dy)
    assert jnp.allclose(out2, ref2, atol=1e-4, rtol=1e-4), "ragged-batch mismatch vs reference"

    print("KERNEL_OK")
</pallas_src>

<mosaic_0001>
module attributes {stable_mosaic.version = 11 : i64} {
  func.func @backward_forward_kernel(%arg0: i32, %arg1: memref<8x32xf32, #tpu.memory_space<vmem>>, %arg2: memref<32x64xf32, #tpu.memory_space<vmem>>, %arg3: memref<1x64xf32, #tpu.memory_space<vmem>>, %arg4: memref<64x64xf32, #tpu.memory_space<vmem>>, %arg5: memref<1x64xf32, #tpu.memory_space<vmem>>, %arg6: memref<64x32xf32, #tpu.memory_space<vmem>>, %arg7: memref<1x32xf32, #tpu.memory_space<vmem>>, %arg8: memref<8x32xf32, #tpu.memory_space<vmem>>) attributes {dimension_semantics = [#tpu.dimension_semantics<parallel>], iteration_bounds = array<i64: 1>, scalar_prefetch = 0 : i64, scratch_operands = 0 : i64, tpu.core_type = #tpu.core_type<tc>, window_params = [{transform_indices = @transform_0, window_bounds = array<i64: 8, 32>}, {pipeline_mode = #tpu.pipeline_mode<synchronous>, transform_indices = @transform_1, window_bounds = array<i64: 32, 64>}, {pipeline_mode = #tpu.pipeline_mode<synchronous>, transform_indices = @transform_2, window_bounds = array<i64: 1, 64>}, {pipeline_mode = #tpu.pipeline_mode<synchronous>, transform_indices = @transform_3, window_bounds = array<i64: 64, 64>}, {pipeline_mode = #tpu.pipeline_mode<synchronous>, transform_indices = @transform_4, window_bounds = array<i64: 1, 64>}, {pipeline_mode = #tpu.pipeline_mode<synchronous>, transform_indices = @transform_5, window_bounds = array<i64: 64, 32>}, {pipeline_mode = #tpu.pipeline_mode<synchronous>, transform_indices = @transform_6, window_bounds = array<i64: 1, 32>}, {transform_indices = @transform_7, window_bounds = array<i64: 8, 32>}]} {
    %c0 = arith.constant 0 : index
    %c0_0 = arith.constant 0 : index
    %0 = vector.load %arg1[%c0, %c0_0] : memref<8x32xf32, #tpu.memory_space<vmem>>, vector<8x32xf32>
    %c0_1 = arith.constant 0 : index
    %c0_2 = arith.constant 0 : index
    %1 = vector.load %arg2[%c0_1, %c0_2] : memref<32x64xf32, #tpu.memory_space<vmem>>, vector<32x64xf32>
    %cst = arith.constant dense<0.000000e+00> : vector<8x64xf32>
    %2 = tpu.matmul %0, %1, %cst {dimension_numbers = #tpu.dot_dimension_numbers<[1], [0], [0], [1], [0, 0, 1, 1], [], []>} : vector<8x32xf32>, vector<32x64xf32>, vector<8x64xf32> -> vector<8x64xf32>
    %c0_3 = arith.constant 0 : index
    %c0_4 = arith.constant 0 : index
    %3 = vector.load %arg3[%c0_3, %c0_4] : memref<1x64xf32, #tpu.memory_space<vmem>>, vector<1x64xf32>
    %4 = vector.broadcast %3 : vector<1x64xf32> to vector<8x64xf32>
    %5 = arith.addf %2, %4 : vector<8x64xf32>
    %cst_5 = arith.constant 0.000000e+00 : f32
    %6 = vector.broadcast %cst_5 : f32 to vector<8x64xf32>
    %7 = arith.maximumf %5, %6 : vector<8x64xf32>
    %c0_6 = arith.constant 0 : index
    %c0_7 = arith.constant 0 : index
    %8 = vector.load %arg4[%c0_6, %c0_7] : memref<64x64xf32, #tpu.memory_space<vmem>>, vector<64x64xf32>
    %cst_8 = arith.constant dense<0.000000e+00> : vector<8x64xf32>
    %9 = tpu.matmul %7, %8, %cst_8 {dimension_numbers = #tpu.dot_dimension_numbers<[1], [0], [0], [1], [0, 0, 1, 1], [], []>} : vector<8x64xf32>, vector<64x64xf32>, vector<8x64xf32> -> vector<8x64xf32>
    %c0_9 = arith.constant 0 : index
    %c0_10 = arith.constant 0 : index
    %10 = vector.load %arg5[%c0_9, %c0_10] : memref<1x64xf32, #tpu.memory_space<vmem>>, vector<1x64xf32>
    %11 = vector.broadcast %10 : vector<1x64xf32> to vector<8x64xf32>
    %12 = arith.addf %9, %11 : vector<8x64xf32>
    %cst_11 = arith.constant 0.000000e+00 : f32
    %13 = vector.broadcast %cst_11 : f32 to vector<8x64xf32>
    %14 = arith.maximumf %12, %13 : vector<8x64xf32>
    %c0_12 = arith.constant 0 : index
    %c0_13 = arith.constant 0 : index
    %15 = vector.load %arg6[%c0_12, %c0_13] : memref<64x32xf32, #tpu.memory_space<vmem>>, vector<64x32xf32>
    %cst_14 = arith.constant dense<0.000000e+00> : vector<8x32xf32>
    %16 = tpu.matmul %14, %15, %cst_14 {dimension_numbers = #tpu.dot_dimension_numbers<[1], [0], [0], [1], [0, 0, 1, 1], [], []>} : vector<8x64xf32>, vector<64x32xf32>, vector<8x32xf32> -> vector<8x32xf32>
    %c0_15 = arith.constant 0 : index
    %c0_16 = arith.constant 0 : index
    %17 = vector.load %arg7[%c0_15, %c0_16] : memref<1x32xf32, #tpu.memory_space<vmem>>, vector<1x32xf32>
    %18 = vector.broadcast %17 : vector<1x32xf32> to vector<8x32xf32>
    %19 = arith.addf %16, %18 : vector<8x32xf32>
    %c0_17 = arith.constant 0 : index
    %c0_18 = arith.constant 0 : index
    %20 = vector.load %arg8[%c0_17, %c0_18] : memref<8x32xf32, #tpu.memory_space<vmem>>, vector<8x32xf32>
    tpu.vector_store %arg8[%c0_17, %c0_18], %19 {strides = array<i32>} : memref<8x32xf32, #tpu.memory_space<vmem>>, vector<8x32xf32>,
    return
  }
  func.func @transform_0(%arg0: i32) -> (i32, i32) {
    %c0_i32 = arith.constant 0 : i32
    %c0_i32_0 = arith.constant 0 : i32
    return %arg0, %c0_i32 : i32, i32
  }
  func.func @transform_1(%arg0: i32) -> (i32, i32) {
    %c0_i32 = arith.constant 0 : i32
    %c0_i32_0 = arith.constant 0 : i32
    %c0_i32_1 = arith.constant 0 : i32
    return %c0_i32, %c0_i32_0 : i32, i32
  }
  func.func @transform_2(%arg0: i32) -> (i32, i32) {
    %c0_i32 = arith.constant 0 : i32
    %c0_i32_0 = arith.constant 0 : i32
    %c0_i32_1 = arith.constant 0 : i32
    return %c0_i32, %c0_i32_0 : i32, i32
  }
  func.func @transform_3(%arg0: i32) -> (i32, i32) {
    %c0_i32 = arith.constant 0 : i32
    %c0_i32_0 = arith.constant 0 : i32
    %c0_i32_1 = arith.constant 0 : i32
    return %c0_i32, %c0_i32_0 : i32, i32
  }
  func.func @transform_4(%arg0: i32) -> (i32, i32) {
    %c0_i32 = arith.constant 0 : i32
    %c0_i32_0 = arith.constant 0 : i32
    %c0_i32_1 = arith.constant 0 : i32
    return %c0_i32, %c0_i32_0 : i32, i32
  }
  func.func @transform_5(%arg0: i32) -> (i32, i32) {
    %c0_i32 = arith.constant 0 : i32
    %c0_i32_0 = arith.constant 0 : i32
    %c0_i32_1 = arith.constant 0 : i32
    return %c0_i32, %c0_i32_0 : i32, i32
  }
  func.func @transform_6(%arg0: i32) -> (i32, i32) {
    %c0_i32 = arith.constant 0 : i32
    %c0_i32_0 = arith.constant 0 : i32
    %c0_i32_1 = arith.constant 0 : i32
    return %c0_i32, %c0_i32_0 : i32, i32
  }
  func.func @transform_7(%arg0: i32) -> (i32, i32) {
    %c0_i32 = arith.constant 0 : i32
    %c0_i32_0 = arith.constant 0 : i32
    return %arg0, %c0_i32 : i32, i32
  }
}

</mosaic_0001>

<bundles_post_ra>
// kernel: backward_forward.1
= control target key start
LH: loop header
LB: loop body
LE: loop exit
PB: predicated region body
PF: predicated region fallthrough
CT: control target
= control target key end

     0   :  { %s301_s0 = inlined_call_operand.vmem [shape: f32[8,32], index: 0, kind: input, shape index: {}]   ;;  %s302_s1 = inlined_call_operand.vmem [shape: f32[32,64], index: 1, kind: input, shape index: {}]   ;;  %s303_s2 = inlined_call_operand.vmem [shape: f32[1,64], index: 2, kind: input, shape index: {}]   ;;  %s304_s3 = inlined_call_operand.vmem [shape: f32[64,64], index: 3, kind: input, shape index: {}]   ;;  %s305_s4 = inlined_call_operand.vmem [shape: f32[1,64], index: 4, kind: input, shape index: {}]   ;;  %s306_s5 = inlined_call_operand.vmem [shape: f32[64,32], index: 5, kind: input, shape index: {}]   ;;  %s307_s6 = inlined_call_operand.vmem [shape: f32[1,32], index: 6, kind: input, shape index: {}]   ;;  %s308_s7 = inlined_call_operand.hbm [shape: f32[8,32], index: 7, kind: output, shape index: {}]  }
   0x1   :  { %v31_v0 = vld [vmem:[%s302_s1 + $0x18] sm:$0xff]  ;;  %v30_v1 = vld [vmem:[%s302_s1 + $0x10] sm:$0xff]  ;;  %v29_v3 = vld [vmem:[%s302_s1 + $0x8] sm:$0xff] }
   0x2   :  { %52 = vmatpush.msra.mxu0 %v31_v0  ;;  %v68_v2 = vld [vmem:[%s304_s3 + $0x38] sm:$0xff]  ;;  %v67_v4 = vld [vmem:[%s304_s3 + $0x30] sm:$0xff]  ;;  %v28_v5 = vld [vmem:[%s302_s1] sm:$0xff] }
   0x3   :  { %85 = vmatpush.msra.mxu1 %v68_v2  ;;  %v66_v6 = vld [vmem:[%s304_s3 + $0x28] sm:$0xff] }
   0x4   :  { %53 = vmatpush.msra.mxu0 %v30_v1 }
   0x5   :  { %86 = vmatpush.msra.mxu1 %v67_v4 }
   0x6   :  { %12 = vsyncpa [#allocation3], 0  ;;  %54 = vmatpush.msra.mxu0 %v29_v3  ;;  %v27_v7 = vld [vmem:[%s301_s0] sm:$0xff]  ;;  %vm36_vm0 = vcmask 261120   ;;  %v64_v9 = vld [vmem:[%s304_s3 + $0x18] sm:$0xff]  ;;  %vm73_vm1 = vcmask 523264  }
   0x7   :  { %v65_v8 = vld [vmem:[%s304_s3 + $0x20] sm:$0xff]  ;;  %87 = vmatpush.msra.mxu1 %v66_v6  ;;  %v63_v10 = vld [vmem:[%s304_s3 + $0x10] sm:$0xff]  ;;  %v62_v11 = vld [vmem:[%s304_s3 + $0x8] sm:$0xff]  ;;  %s183_s21 = smov [#allocation2]   ;;  %s141_s24 = sshll.u32 %s308_s7, 4  ;;  %s142_s24 = int_to_ptr.hbm [resolvable:$true] %s141_s24 }
   0x8   :  { %55 = vmatpush.msra.mxu0 %v28_v5  ;;  %v61_v12 = vld [vmem:[%s304_s3] sm:$0xff]  ;;  %v105_v13 = vld [vmem:[%s306_s5 + $0x38] sm:$0xff]  ;;  %v104_v14 = vld [vmem:[%s306_s5 + $0x30] sm:$0xff]  ;;  %s139_s0 = sshll.u32 %s183_s21, 4  ;;  %s140_s0 = int_to_ptr.vmem [resolvable:$true] %s139_s0 }
   0x9   :  { %150 = vmatmul.msk.f32.vlgmr.msra.gmra.mxu0 %vm36_vm0, %v27_v7  ;;  %88 = vmatpush.msra.mxu1 %v65_v8  ;;  %v103_v15 = vld [vmem:[%s306_s5 + $0x28] sm:$0xff]  ;;  %v102_v16 = vld [vmem:[%s306_s5 + $0x20] sm:$0xff]  ;;  %v101_v17 = vld [vmem:[%s306_s5 + $0x18] sm:$0xff] }
   0xa   :  { %121 = vmatpush.msra.mxu2 %v105_v13  ;;  %v154_v18 = vld [vmem:[%s303_s2] ss:$0 sm:$0xff]  ;;  %v100_v22 = vld [vmem:[%s306_s5 + $0x10] sm:$0xff]  ;;  %v99_v23 = vld [vmem:[%s306_s5 + $0x8] sm:$0xff] }
   0xb   :  { %89 = vmatpush.msra.mxu1 %v64_v9  ;;  %v98_v24 = vld [vmem:[%s306_s5] sm:$0xff] }
   0xc   :  { %122 = vmatpush.msra.mxu2 %v104_v14  ;;  %v155_v25 = vld [vmem:[%s305_s4] ss:$0 sm:$0xff] }
   0xd   :  { %90 = vmatpush.msra.mxu1 %v63_v10  ;;  %v156_v29 = vld [vmem:[%s307_s6] ss:$0 sm:$0xff] }
   0xe   :  { %123 = vmatpush.msra.mxu2 %v103_v15 }
   0xf   :  { %91 = vmatpush.msra.mxu1 %v62_v11 }
  0x10   :  { %124 = vmatpush.msra.mxu2 %v102_v16 }
  0x11   :  { %92 = vmatpush.msra.mxu1 %v61_v12 }
  0x12   :  { %125 = vmatpush.msra.mxu2 %v101_v17 }
  0x14   :  { %126 = vmatpush.msra.mxu2 %v100_v22 }
  0x16   :  { %127 = vmatpush.msra.mxu2 %v99_v23 }
  0x18   :  { %128 = vmatpush.msra.mxu2 %v98_v24 }
  0x86   :  { %v57_v19 = vpop.f32.mrf.mxu0 }
  0x87   :  { %v58_v20 = vadd.f32 %v154_v18, %v57_v19 }
  0x89   :  { %v60_v21 = vmax.f32 %v58_v20, 0.0 }
  0x8b   :  { %151 = vmatmul.msk.f32.vlgmr.msra.gmra.mxu1 %vm73_vm1, %v60_v21 }
 0x108   :  { %v94_v26 = vpop.f32.mrf.mxu1 }
 0x109   :  { %v95_v27 = vadd.f32 %v155_v25, %v94_v26 }
 0x10b   :  { %v97_v28 = vmax.f32 %v95_v27, 0.0 }
 0x10d   :  { %152 = vmatmul.msk.f32.vlgmr.msra.gmra.mxu2 %vm73_vm1, %v97_v28 }
 0x190   :  { %v130_v30 = vpop.f32.mrf.mxu2 }
 0x191   :  { %v131_v31 = vadd.f32 %v156_v29, %v130_v30 }
 0x193   :  { %133 = vst.msk [vmem:[#allocation2] sm:$0xff] %vm36_vm0, %v131_v31 }
 0x194   :  { %144 = dma.vmem_to_hbm [thread:$0]  %s140_s0, 128, %s142_s24, [#allocation3]  }
 0x195   :  { %181 = dma.done.wait [#allocation3], 128  }
 0x196   :  { %182 = vsyncadd [#allocation3], 4294967168 }
 0x197   :  { %149 = vsyncpa [#allocation3], 1 }

</bundles_post_ra>
